<compile_context>
chip_gen: v7x
topology: tpu7x:2x2x1
jax: 0.10.0
libtpu: 0.0.40
codegen_flags: <defaults>
</compile_context>

<pallas_src>
import math

import jax
import jax.numpy as jnp
from jax.experimental import pallas as pl
from jax.experimental.pallas import tpu as pltpu


def _round_up(x, m):
    return (x + m - 1) // m * m


def _cdiv(a, b):
    return (a + b - 1) // b


def _make_wol_kernel(group_size):
    """Kernel: one (tm, tn) output tile; grid axis 2 (K) is the reduction."""

    def kernel(x_ref, qw_ref, s_ref, z_ref, b_ref, o_ref, acc_ref):
        k = pl.program_id(2)

        @pl.when(k == 0)
        def _():
            # Fuse the bias into the accumulator init.
            acc_ref[...] = jnp.broadcast_to(
                b_ref[...].astype(jnp.float32), acc_ref.shape)

        tk, tn = qw_ref.shape
        gpt = tk // group_size          # whole groups per K tile (static)

        # In-kernel dequant of the weight tile on the VPU in f32 (keeps the
        # int codes exact; v5e has no bf16 VALU).  s_ref / z_ref are
        # (gpt, 1, tn) and broadcast over the group_size rows of each group.
        q = qw_ref[...].astype(jnp.float32).reshape(gpt, group_size, tn)
        w = ((q - z_ref[...]) * s_ref[...]).reshape(tk, tn).astype(jnp.bfloat16)

        acc_ref[...] += jnp.dot(x_ref[...], w,
                                preferred_element_type=jnp.float32)

        @pl.when(k == pl.num_programs(2) - 1)
        def _():
            o_ref[...] = acc_ref[...].astype(o_ref.dtype)

    return kernel


def prepare_weight_only_linear(qweight, scales, zeros, bias, group_size, *,
                               tn=None, tk=None, tm_cap=256):
    """One-time (weight-load time) preparation.  Nothing here runs per-forward.

    qweight: (out_features, in_features) integer codes in [0, 2**bits)
    scales:  (out_features, n_groups) float
    zeros:   (out_features, n_groups) zero points
    bias:    (out_features,) float
    """
    N, K = qweight.shape
    if group_size == -1:
        group_size = K
    assert K % group_size == 0, (K, group_size)
    n_groups = K // group_size

    # K tile: must hold whole groups AND be a lane multiple for the X tile.
    tk_unit = group_size * 128 // math.gcd(group_size, 128)   # lcm(gs, 128)
    if tk is None:
        tk = min(_round_up(K, tk_unit),
                 max(tk_unit, (2048 // tk_unit) * tk_unit))
    assert tk % tk_unit == 0, (tk, tk_unit)

    # N tile: lane-dense; keep >= 2 N blocks so both v7x TensorCores get work
    # even when the whole M fits in one tile (decode-style calls).
    if tn is None:
        tn = min(_round_up(N, 128), 1024)
        if N > 128 and _cdiv(N, tn) < 2:
            tn = max(128, _round_up(_cdiv(N, 2), 128))
    assert tn % 128 == 0

    Kp, Np = _round_up(K, tk), _round_up(N, tn)
    n_groups_p = Kp // group_size

    # Padded, transposed, kernel-ready storage.  Padded scale columns are 0 so
    # padded weight entries dequantize to exactly 0.
    qw_t = jnp.zeros((Kp, Np), jnp.int8)
    qw_t = qw_t.at[:K, :N].set(qweight.astype(jnp.int8).T)
    sc = jnp.zeros((n_groups_p, 1, Np), jnp.float32)
    sc = sc.at[:n_groups, 0, :N].set(scales.astype(jnp.float32).T)
    zp = jnp.zeros((n_groups_p, 1, Np), jnp.float32)
    zp = zp.at[:n_groups, 0, :N].set(zeros.astype(jnp.float32).T)
    b = jnp.zeros((1, Np), jnp.float32)
    b = b.at[0, :N].set(bias.astype(jnp.float32).reshape(-1))

    return dict(qweight_t=qw_t, scales=sc, zeros=zp, bias=b,
                in_features=K, out_features=N, group_size=group_size,
                tn=tn, tk=tk, tm_cap=tm_cap)


def weight_only_linear(x, params, input_scale=None, *, tm=None):
    """y = (x * input_scale) @ dequant(qweight).T + bias (tiled Pallas GEMM)."""
    K, N = params["in_features"], params["out_features"]
    qw_t, sc, zp, b = (params["qweight_t"], params["scales"],
                       params["zeros"], params["bias"])
    tn, tk, group_size = params["tn"], params["tk"], params["group_size"]
    Kp, Np = qw_t.shape
    gpt = tk // group_size

    lead = x.shape[:-1]
    assert x.shape[-1] == K, (x.shape, K)
    out_dtype = x.dtype
    x2 = x.reshape(-1, K)
    M = x2.shape[0]

    # Activation scale folds into X (M x K, cheap); weight codes stay exact.
    if input_scale is not None:
        x2 = x2 * input_scale.reshape(1, K).astype(x2.dtype)
    x2 = x2.astype(jnp.bfloat16)          # bf16 MXU operand, f32 accumulation

    if tm is None:
        tm = min(_round_up(M, 8), params["tm_cap"])
    Mp = _round_up(M, tm)
    if (Mp, Kp) != (M, K):
        x2 = jnp.pad(x2, ((0, Mp - M), (0, Kp - K)))

    grid = (Mp // tm, Np // tn, Kp // tk)
    gm, gn, gk = grid

    cost = pl.CostEstimate(
        flops=2 * Mp * Np * Kp,
        transcendentals=0,
        bytes_accessed=int(
            Mp * Kp * 2 * gn                           # X (bf16), once per N tile
            + Kp * Np * 1 * gm                         # int8 weight codes
            + 2 * (Kp // group_size) * Np * 4 * gm     # scales + zero points
            + Np * 4 * gm                              # bias
            + Mp * Np * jnp.dtype(out_dtype).itemsize))

    out = pl.pallas_call(
        _make_wol_kernel(group_size),
        out_shape=jax.ShapeDtypeStruct((Mp, Np), out_dtype),
        grid_spec=pltpu.PrefetchScalarGridSpec(
            num_scalar_prefetch=0,
            grid=grid,
            in_specs=[
                pl.BlockSpec((tm, tk), lambda i, j, k: (i, k)),         # X
                pl.BlockSpec((tk, tn), lambda i, j, k: (k, j)),         # int8 W
                pl.BlockSpec((gpt, 1, tn), lambda i, j, k: (k, 0, j)),  # scales
                pl.BlockSpec((gpt, 1, tn), lambda i, j, k: (k, 0, j)),  # zeros
                pl.BlockSpec((1, tn), lambda i, j, k: (0, j)),          # bias
            ],
            out_specs=pl.BlockSpec((tm, tn), lambda i, j, k: (i, j)),
            scratch_shapes=[pltpu.VMEM((tm, tn), jnp.float32)],
        ),
        compiler_params=pltpu.CompilerParams(
            dimension_semantics=("parallel", "parallel", "arbitrary"),
            vmem_limit_bytes=48 * 1024 * 1024,   # safe on v7x (64 MiB physical)
        ),
        cost_estimate=cost,
    )(x2, qw_t, sc, zp, b)

    return out[:M, :N].reshape(lead + (N,))


def dequantize_weight_reference(qweight, scales, zeros, group_size):
    """Plain-JAX reference dequant (used only to verify the kernel)."""
    out_f, in_f = qweight.shape
    n_groups = in_f // group_size
    q = qweight.reshape(out_f, n_groups, group_size).astype(jnp.float32)
    w = (q - zeros[:, :, None].astype(jnp.float32)) * scales[:, :, None]
    return w.reshape(out_f, in_f)


if __name__ == "__main__":
    key = jax.random.PRNGKey(0)
    kx, kq, ks, kb, ka = jax.random.split(key, 5)

    # Small WeightOnlyLinear config: int4 codes, group_size=128.
    batch, seq = 2, 4
    in_features, out_features = 512, 384
    bits, group_size = 4, 128
    n_groups = in_features // group_size

    x = jax.random.normal(kx, (batch, seq, in_features), dtype=jnp.float32)
    qweight = jax.random.randint(kq, (out_features, in_features), 0, 2 ** bits,
                                 dtype=jnp.int32)
    scales = (jax.random.uniform(ks, (out_features, n_groups),
                                 dtype=jnp.float32) * 0.01 + 0.005)
    zeros = jnp.full((out_features, n_groups), float(2 ** (bits - 1)),
                     dtype=jnp.float32)
    bias = jax.random.normal(kb, (out_features,), dtype=jnp.float32)
    input_scale = (jax.random.uniform(ka, (in_features,), dtype=jnp.float32)
                   + 0.5)

    # One-time weight preparation (kept off the per-call path).  tk=256
    # (2 groups / tile) exercises the K reduction loop; tn defaults to 256 so
    # the demo also exercises N padding (384 -> 512) and a 2-block N grid.
    params = prepare_weight_only_linear(qweight, scales, zeros, bias,
                                        group_size, tk=256)

    out = weight_only_linear(x, params, input_scale)
    out = jax.block_until_ready(out)

    # Plain f32 reference.
    w_fp = dequantize_weight_reference(qweight, scales, zeros, group_size)
    ref = (x * input_scale) @ w_fp.T + bias
    assert out.shape == (batch, seq, out_features), out.shape
    max_err = float(jnp.max(jnp.abs(out - ref)))
    # bf16 MXU operands with f32 accumulation -> relaxed tolerance vs f32 ref.
    assert jnp.allclose(out, ref, atol=5e-2, rtol=5e-2), max_err

    print("KERNEL_OK")
</pallas_src>

<mosaic_0001>
module attributes {stable_mosaic.version = 11 : i64} {
  func.func @kernel(%arg0: i32, %arg1: i32, %arg2: i32, %arg3: memref<8x256xbf16, #tpu.memory_space<vmem>>, %arg4: memref<256x256xi8, #tpu.memory_space<vmem>>, %arg5: memref<2x1x256xf32, #tpu.memory_space<vmem>>, %arg6: memref<2x1x256xf32, #tpu.memory_space<vmem>>, %arg7: memref<1x256xf32, #tpu.memory_space<vmem>>, %arg8: memref<8x256xf32, #tpu.memory_space<vmem>>, %arg9: memref<8x256xf32, #tpu.memory_space<vmem>>) attributes {dimension_semantics = [#tpu.dimension_semantics<parallel>, #tpu.dimension_semantics<parallel>, #tpu.dimension_semantics<arbitrary>], iteration_bounds = array<i64: 1, 2, 2>, scalar_prefetch = 0 : i64, scratch_operands = 1 : i64, tpu.core_type = #tpu.core_type<tc>, window_params = [{transform_indices = @transform_0, window_bounds = array<i64: 8, 256>}, {transform_indices = @transform_1, window_bounds = array<i64: 256, 256>}, {transform_indices = @transform_2, window_bounds = array<i64: 2, 1, 256>}, {transform_indices = @transform_3, window_bounds = array<i64: 2, 1, 256>}, {transform_indices = @transform_4, window_bounds = array<i64: 1, 256>}, {transform_indices = @transform_5, window_bounds = array<i64: 8, 256>}]} {
    %c0_i32 = arith.constant 0 : i32
    %0 = arith.cmpi eq, %arg2, %c0_i32 : i32
    %1 = arith.extui %0 : i1 to i32
    %c0_i32_0 = arith.constant 0 : i32
    %2 = arith.cmpi ne, %1, %c0_i32_0 : i32
    scf.if %2 {
      %c0_15 = arith.constant 0 : index
      %c0_16 = arith.constant 0 : index
      %22 = vector.load %arg7[%c0_15, %c0_16] : memref<1x256xf32, #tpu.memory_space<vmem>>, vector<1x256xf32>
      %23 = vector.shape_cast %22 : vector<1x256xf32> to vector<1x256xf32>
      %24 = vector.broadcast %23 : vector<1x256xf32> to vector<8x256xf32>
      %c0_17 = arith.constant 0 : index
      %c0_18 = arith.constant 0 : index
      %25 = vector.load %arg9[%c0_17, %c0_18] : memref<8x256xf32, #tpu.memory_space<vmem>>, vector<8x256xf32>
      tpu.vector_store %arg9[%c0_17, %c0_18], %24 {strides = array<i32>} : memref<8x256xf32, #tpu.memory_space<vmem>>, vector<8x256xf32>,
    } else {
    }
    %c0 = arith.constant 0 : index
    %c0_1 = arith.constant 0 : index
    %3 = vector.load %arg4[%c0, %c0_1] : memref<256x256xi8, #tpu.memory_space<vmem>>, vector<256x256xi8>
    %4 = arith.sitofp %3 : vector<256x256xi8> to vector<256x256xf32>
    %5 = vector.shape_cast %4 : vector<256x256xf32> to vector<2x128x256xf32>
    %c0_2 = arith.constant 0 : index
    %c0_3 = arith.constant 0 : index
    %c0_4 = arith.constant 0 : index
    %6 = vector.load %arg6[%c0_2, %c0_3, %c0_4] : memref<2x1x256xf32, #tpu.memory_space<vmem>>, vector<2x1x256xf32>
    %7 = vector.broadcast %6 : vector<2x1x256xf32> to vector<2x128x256xf32>
    %8 = arith.subf %5, %7 : vector<2x128x256xf32>
    %c0_5 = arith.constant 0 : index
    %c0_6 = arith.constant 0 : index
    %c0_7 = arith.constant 0 : index
    %9 = vector.load %arg5[%c0_5, %c0_6, %c0_7] : memref<2x1x256xf32, #tpu.memory_space<vmem>>, vector<2x1x256xf32>
    %10 = vector.broadcast %9 : vector<2x1x256xf32> to vector<2x128x256xf32>
    %11 = arith.mulf %8, %10 : vector<2x128x256xf32>
    %12 = vector.shape_cast %11 : vector<2x128x256xf32> to vector<256x256xf32>
    %13 = arith.truncf %12 : vector<256x256xf32> to vector<256x256xbf16>
    %c0_8 = arith.constant 0 : index
    %c0_9 = arith.constant 0 : index
    %14 = vector.load %arg9[%c0_8, %c0_9] : memref<8x256xf32, #tpu.memory_space<vmem>>, vector<8x256xf32>
    %c0_10 = arith.constant 0 : index
    %c0_11 = arith.constant 0 : index
    %15 = vector.load %arg3[%c0_10, %c0_11] : memref<8x256xbf16, #tpu.memory_space<vmem>>, vector<8x256xbf16>
    %cst = arith.constant dense<0.000000e+00> : vector<8x256xf32>
    %16 = tpu.matmul %15, %13, %cst {dimension_numbers = #tpu.dot_dimension_numbers<[1], [0], [0], [1], [0, 0, 1, 1], [], []>} : vector<8x256xbf16>, vector<256x256xbf16>, vector<8x256xf32> -> vector<8x256xf32>
    %17 = arith.addf %14, %16 : vector<8x256xf32>
    %c0_12 = arith.constant 0 : index
    %c0_13 = arith.constant 0 : index
    %18 = vector.load %arg9[%c0_12, %c0_13] : memref<8x256xf32, #tpu.memory_space<vmem>>, vector<8x256xf32>
    tpu.vector_store %arg9[%c0_12, %c0_13], %17 {strides = array<i32>} : memref<8x256xf32, #tpu.memory_space<vmem>>, vector<8x256xf32>,
    %c1_i32 = arith.constant 1 : i32
    %19 = arith.cmpi eq, %arg2, %c1_i32 : i32
    %20 = arith.extui %19 : i1 to i32
    %c0_i32_14 = arith.constant 0 : i32
    %21 = arith.cmpi ne, %20, %c0_i32_14 : i32
    scf.if %21 {
      %c0_15 = arith.constant 0 : index
      %c0_16 = arith.constant 0 : index
      %22 = vector.load %arg9[%c0_15, %c0_16] : memref<8x256xf32, #tpu.memory_space<vmem>>, vector<8x256xf32>
      %c0_17 = arith.constant 0 : index
      %c0_18 = arith.constant 0 : index
      %23 = vector.load %arg8[%c0_17, %c0_18] : memref<8x256xf32, #tpu.memory_space<vmem>>, vector<8x256xf32>
      tpu.vector_store %arg8[%c0_17, %c0_18], %22 {strides = array<i32>} : memref<8x256xf32, #tpu.memory_space<vmem>>, vector<8x256xf32>,
    } else {
    }
    return
  }
  func.func @transform_0(%arg0: i32, %arg1: i32, %arg2: i32) -> (i32, i32) {
    %c0_i32 = arith.constant 0 : i32
    return %arg0, %arg2 : i32, i32
  }
  func.func @transform_1(%arg0: i32, %arg1: i32, %arg2: i32) -> (i32, i32) {
    %c0_i32 = arith.constant 0 : i32
    return %arg2, %arg1 : i32, i32
  }
  func.func @transform_2(%arg0: i32, %arg1: i32, %arg2: i32) -> (i32, i32, i32) {
    %c0_i32 = arith.constant 0 : i32
    %c0_i32_0 = arith.constant 0 : i32
    return %arg2, %c0_i32, %arg1 : i32, i32, i32
  }
  func.func @transform_3(%arg0: i32, %arg1: i32, %arg2: i32) -> (i32, i32, i32) {
    %c0_i32 = arith.constant 0 : i32
    %c0_i32_0 = arith.constant 0 : i32
    return %arg2, %c0_i32, %arg1 : i32, i32, i32
  }
  func.func @transform_4(%arg0: i32, %arg1: i32, %arg2: i32) -> (i32, i32) {
    %c0_i32 = arith.constant 0 : i32
    %c0_i32_0 = arith.constant 0 : i32
    return %c0_i32, %arg1 : i32, i32
  }
  func.func @transform_5(%arg0: i32, %arg1: i32, %arg2: i32) -> (i32, i32) {
    %c0_i32 = arith.constant 0 : i32
    return %arg0, %arg1 : i32, i32
  }
}

</mosaic_0001>

<bundles_post_ra>
// kernel: tpu_custom_call.1
= control target key start
LH: loop header
LB: loop body
LE: loop exit
PB: predicated region body
PF: predicated region fallthrough
CT: control target
= control target key end

     0   :  { %s2181_s0 = inlined_call_operand.hbm [shape: bf16[8,512], index: 0, kind: input, shape index: {}]   ;;  %s2182_s1 = inlined_call_operand.hbm [shape: s8[512,512], index: 1, kind: input, shape index: {}]   ;;  %s2183_s2 = inlined_call_operand.hbm [shape: f32[4,1,512], index: 2, kind: input, shape index: {}]   ;;  %s2184_s3 = inlined_call_operand.hbm [shape: f32[4,1,512], index: 3, kind: input, shape index: {}]   ;;  %s2185_s4 = inlined_call_operand.vmem [shape: f32[1,512], index: 4, kind: input, shape index: {}]   ;;  %s2186_s5 = inlined_call_operand.hbm [shape: f32[8,512], index: 5, kind: output, shape index: {}]  }
   0x1   :  { %2205 = sst [smem:[#allocation28_spill]] %s2181_s0 }
   0x2   :  { %2206 = sst [smem:[#allocation29_spill]] %s2182_s1 }
   0x3   :  { %2207 = sst [smem:[#allocation30_spill]] %s2183_s2 }
   0x4   :  { %2208 = sst [smem:[#allocation31_spill]] %s2185_s4 }
   0x5   :  { %2209 = sst [smem:[#allocation32_spill]] %s2186_s5 }
   0x6   :  { %10 = vsyncpa [#allocation4], 0 }
   0x7   :  { %12 = vsyncpa [#allocation4 + $0x1], 0 }
   0x8   :  { %13 = vsyncpa [#allocation7], 0 }
   0x9   :  { %15 = vsyncpa [#allocation7 + $0x1], 0 }
   0xa   :  { %16 = vsyncpa [#allocation10], 0 }
   0xb   :  { %18 = vsyncpa [#allocation10 + $0x1], 0 }
   0xc   :  { %19 = vsyncpa [#allocation5], 0 }
   0xd   :  { %21 = vsyncpa [#allocation5 + $0x1], 0  ;;  %s1558_s18 = smov 0   ;;  %s1560_s19 = smov 0  }
   0xe   :  { %s1562_s20 = smov 0   ;;  %s1564_s21 = smov 0  }
   0xf   :  { %s1566_s22 = smov 0   ;;  %s1568_s23 = smov 0  }
  0x10   :  { %s1570_s24 = smov 0   ;;  %s1572_s25 = smov 0  }
  0x11   :  { %s1574_s26 = smov 0   ;;  %s1576_s27 = smov 0  }
  0x12   :  { %s1578_s28 = smov 0   ;;  %s1580_s29 = smov 0  }
  0x13   :  { %s1582_s30 = smov 0   ;;  %s1584_s6 = smov 0  }
  0x14 LB: > { %2210 = sst [smem:[#allocation16_spill]] %s1479_s22  ;;  %p2190_p0 = scmp.eq.s32.totalorder %s1515_s6, 0  ;;  %s1515_s6 = sphi %s1584_s6, %s27_s6   ;;  %s1511_s30 = sphi %s1582_s30, %s2265_s30   ;;  %s1507_s29 = sphi %s1580_s29, %s2264_s29   ;;  %s1503_s28 = sphi %s1578_s28, %s2274_s28   ;;  %s1499_s27 = sphi %s1576_s27, %s2273_s27   ;;  %s1495_s26 = sphi %s1574_s26, %s2261_s26   ;;  %s1491_s25 = sphi %s1572_s25, %s2260_s25   ;;  %s1487_s24 = sphi %s1570_s24, %s2272_s24   ;;  %s1483_s23 = sphi %s1568_s23, %s2271_s23   ;;  %s1479_s22 = sphi %s1566_s22, %s2270_s22   ;;  %s1475_s21 = sphi %s1564_s21, %s2257_s21   ;;  %s1471_s20 = sphi %s1562_s20, %s2269_s20   ;;  %s1467_s19 = sphi %s1560_s19, %s2268_s19   ;;  %s1463_s18 = sphi %s1558_s18, %s2267_s18  }
  0x15   : > { %2211 = sst [smem:[#allocation17_spill]] %s1491_s25  ;;  %p90_p1 = scmp.ne.s32.totalorder %s1483_s23, %s1479_s22 }
  0x16   : > { %2212 = sst [smem:[#allocation18_spill]] %s1495_s26  ;;  %p2189_p2 = scmp.lt.s32.totalorder %s1515_s6, 4 }
  0x17   : > { %2213 = sst [smem:[#allocation19_spill]] %s1499_s27  ;;  %p92_p3 = por %p90_p1, %p2190_p0 }
  0x18   : > { %2214 = sst [smem:[#allocation20_spill]] %s1503_s28  ;;  %s251_s9 = sand.u32 1, %s1515_s6  }
  0x19   : > { %2215 = sst [smem:[#allocation21_spill]] %s1507_s29  ;;  %s1638_s10 = sand.u32 1, %s1483_s23  }
  0x1a   : > { %2216 = sst [smem:[#allocation22_spill]] %s1511_s30  ;;  %s1056_s11 = sshll.u32 %s1638_s10, 7 }
  0x1b   : > { %s2188_s12 = sshll.u32 %s1511_s30, 1  ;;  %s1088_s13 = sshll.u32 %s1507_s29, 5 }
  0x1c   : > { %s262_s14 = sadd.s32 %s1088_s13, %s2188_s12  ;;  %s255_s15 = scalar_lea.vmem [#allocation6], %s1056_s11 }
  0x1d   : > { %s265_s16 = sshll.u32 %s255_s15, 4  ;;  %s1060_s17 = sshll.u32 %s262_s14, 7  ;;  %s1645_s16 = int_to_ptr.vmem [resolvable:$true] %s265_s16 }
  0x1e   : > { %s2217_s1 = sld [smem:[#allocation29_spill]]  ;;  %p1654_p4 = pnand %p2189_p2, %p92_p3 }
  0x1f   : > { %s1658_s11 = scalar_lea.sflag [#allocation7], %s251_s9 }
  0x20   : > { %s2218_s27 = scalar_select %p1654_p4, 1, 0 }
  0x21   : > { %p1664_p6 = pneg %p1654_p4 }
  0x24   : > { %s1650_s5 = scalar_lea.hbm %s2217_s1, %s1060_s17  ;;  %s1246_s15 = scalar_lea.hbm %s2217_s1, 8192 }
  0x25   : > { %s1241_s13 = scalar_lea.hbm %s1650_s5, 2048  ;;  %p1247_p9 = scmp.lt.u32.totalorder %s1650_s5, %s2217_s1 }
  0x26   : > { %p1242_p5 = scmp.ne.s32.totalorder %s1650_s5, %s1241_s13  ;;  %p1248_p10 = scmp.lt.u32.totalorder %s1246_s15, %s1241_s13 }
  0x27   : > { %p1250_p12 = scmp.lt.u32.totalorder %s1241_s13, %s1650_s5 }
  0x28   : > { %p1244_p7 = pnand %p1664_p6, %p1242_p5  ;;  %p1249_p11 = por %p1248_p10, %p1247_p9 }
  0x2a   : > { %p1245_p8 = pneg %p1244_p7  ;;  %p1251_p13 = por %p1250_p12, %p1249_p11 }
  0x2c   : > { %p1252_p1 = pnand %p1251_p13, %p1245_p8 }
  0x2e   : > { %1255 = shalt.err (!%p1252_p1)
}
  0x2f   : > { %s1256_s9 = scalar_lea.vmem %s1645_s16, 2048  ;;  %s1517_s7 = smov [#allocation6]  }
  0x30   : > { %p1257_p3 = scmp.ne.s32.totalorder %s1645_s16, %s1256_s9  ;;  %s1261_s8 = sshll.u32 %s1517_s7, 4  ;;  %s1262_s8 = int_to_ptr.vmem [resolvable:$false] %s1261_s8 }
  0x31   : > { %s1263_s12 = scalar_lea.vmem %s1262_s8, 4096  ;;  %p1264_p2 = scmp.lt.s32.totalorder %s1645_s16, %s1262_s8 }
  0x32   : > { %p1259_p5 = pnand %p1257_p3, %p1664_p6  ;;  %p1265_p0 = scmp.lt.s32.totalorder %s1263_s12, %s1256_s9 }
  0x34   : > { %p1260_p7 = pneg %p1259_p5  ;;  %p1266_p9 = por %p1265_p0, %p1264_p2 }
  0x36   : > { %p1267_p10 = pnand %p1266_p9, %p1260_p7 }
  0x38   : > { %1270 = shalt.err (!%p1267_p10)
}
  0x39   : > { %s1518_s13 = smov 512   ;;  %s1519_s15 = smov 256  }
  0x3a   : > { %s1520_s17 = smov 16   ;;  %s1089_s9 = sshll.u32 %s1507_s29, 3 }
  0x3b   : > { %1108 = dma.hbm_to_vmem [thread:$0]  (!%p1654_p4), %s1650_s5, 2048, %s1645_s16, %s1658_s11, %s1518_s13, %s1519_s15, %s1520_s17  }
  0x3c   : > { %p1071_p0 = scmp.ge.s32.totalorder %s1515_s6, 1  ;;  %s2220_s7 = sshll.u32 %s1511_s30, 1 }
  0x3d   : > { %s1692_s8 = sadd.s32 %s1089_s9, %s2220_s7  ;;  %p329_p2 = scmp.lt.s32.totalorder %s1515_s6, 5 }
  0x3e   : > { %s1701_s4 = sadd.s32 4294967295, %s1515_s6   ;;  %s1050_s5 = sadd.s32 4294967294, %s1515_s6  }
  0x3f   : > { %p1696_p8 = pnand %p1071_p0, %p329_p2  ;;  %s39_s16 = sadd.s32 1, %s1507_s29 }
  0x40   : > { %s55_s13 = sadd.s32 1, %s1495_s26  ;;  %p40_p11 = scmp.ge.s32.totalorder %s39_s16, 2 }
  0x41   : > { %s2221_s1 = scalar_select %p1696_p8, 1, 0 }
  0x42   : > { %p62_p12 = scmp.ne.s32.totalorder %s1495_s26, %s1491_s25  ;;  %p68_p13 = scmp.ne.s32.totalorder %s1491_s25, %s1487_s24 }
  0x43   : > { %p69_p1 = scmp.eq.s32.totalorder %s1701_s4, 0  ;;  %s2276_s16 = smov (%p40_p11, %s39_s16), 0 }
  0x44   : > { %2222 = sst [smem:[#allocation23_spill]] %s2276_s16  ;;  %s2223_s15 = sadd.s32 1, %s1511_s30 }
  0x45   : > { %s2278_s15 = smov (!%p40_p11, %s2223_s15), %s1511_s30  ;;  %s51_s17 = ssub.s32 %s1507_s29, %s2276_s16 }
  0x46   : > { %p2224_p3 = scmp.eq.s32.totalorder %s1515_s6, 0  ;;  %p44_p7 = scmp.ge.s32.totalorder %s2278_s15, 2 }
  0x47   : > { %p53_p9 = scmp.eq.s32.totalorder %s51_s17, 0  ;;  %p1724_p10 = por %p69_p1, %p68_p13 }
  0x48   : > { %p1720_p5 = por %p2224_p3, %p62_p12  ;;  %p96_p0 = scmp.ne.s32.totalorder %s1479_s22, %s1475_s21 }
  0x49   : > { %s2226_s24 = scalar_select %p1724_p10, 1, 0 }
  0x4a   : > { %s2280_s15 = smov (%p44_p7, %s2278_s15), 0  ;;  %p1737_p2 = por %p96_p0, %p69_p1 }
  0x4b   : > { %2227 = sst [smem:[#allocation24_spill]] %s2226_s24  ;;  %s79_s12 = ssub.s32 %s1511_s30, %s2280_s15 }
  0x4c   : > { %2228 = sst [smem:[#allocation25_spill]] %s2280_s15  ;;  %s80_s28 = sor.u32 %s79_s12, %s51_s17 }
  0x4d   : > { %s1733_s7 = scalar_select %p53_p9, %s1495_s26, %s55_s13  }
  0x4e   : > { %s2230_s16 = scalar_select %p1737_p2, 1, 0 }
  0x4f   : > { %2229 = sst [smem:[#allocation26_spill]] %s1733_s7  ;;  %p191_p11 = scmp.eq.s32.totalorder %s79_s12, 0 }
  0x50   : > { %p81_p12 = scmp.eq.s32.totalorder %s80_s28, 0  ;;  %s193_s25 = sadd.s32 1, %s1471_s20 }
  0x51   : > { %s1743_s24 = scalar_select %p191_p11, %s1471_s20, %s193_s25  }
  0x52   : > { %s2231_s21 = sadd.s32 1, %s1483_s23  ;;  %p203_p13 = scmp.ne.s32.totalorder %s1471_s20, %s1467_s19 }
  0x53   : > { %s1748_s22 = scalar_select %p81_p12, %s1483_s23, %s2231_s21  }
  0x54   : > { %p204_p3 = scmp.eq.s32.totalorder %s1701_s4, 3  ;;  %p209_p7 = scmp.ne.s32.totalorder %s1467_s19, %s1463_s18 }
  0x55   : > { %2232 = sst [smem:[#allocation27_spill]] %s1748_s22  ;;  %p210_p9 = scmp.eq.s32.totalorder %s1050_s5, 3 }
  0x56   : > { %p1755_p1 = por %p204_p3, %p203_p13  ;;  %s230_s17 = sand.u32 1, %s1495_s26  }
  0x57   : > { %p1760_p0 = por %p210_p9, %p209_p7  ;;  %s1053_s12 = sshll.u32 %s230_s17, 3 }
  0x58   : > { %s2233_s13 = scalar_select %p1755_p1, 1, 0 }
  0x59   : > { %s2234_s28 = scalar_select %p1760_p0, 1, 0 }
  0x5a   : > { %s1087_s25 = sshll.u32 %s1507_s29, 7  ;;  %s2235_s0 = sld [smem:[#allocation28_spill]] }
  0x5b   : > { %s234_s5 = scalar_lea.vmem [#allocation3], %s1053_s12  ;;  %p2236_p11 = scmp.lt.s32.totalorder %s1515_s6, 4 }
  0x5c   : > { %s244_s7 = sshll.u32 %s234_s5, 4  ;;  %s1061_s29 = sshll.u32 %s1638_s10, 2  ;;  %s1778_s7 = int_to_ptr.vmem [resolvable:$true] %s244_s7 }
  0x5d   : > { %p1774_p12 = pnand %p2236_p11, %p1720_p5  ;;  %s231_s30 = scalar_lea.sflag [#allocation4], %s230_s17 }
  0x5f   : > { %p1273_p3 = pneg %p1774_p12 }
  0x60   : > { %s1768_s21 = scalar_lea.hbm %s2235_s0, %s1087_s25  ;;  %s1276_s25 = scalar_lea.hbm %s2235_s0, 256 }
  0x61   : > { %s1271_s15 = scalar_lea.hbm %s1768_s21, 128  ;;  %p1277_p5 = scmp.lt.u32.totalorder %s1768_s21, %s2235_s0 }
  0x62   : > { %p1272_p13 = scmp.ne.s32.totalorder %s1768_s21, %s1271_s15  ;;  %p1278_p11 = scmp.lt.u32.totalorder %s1276_s25, %s1271_s15 }
  0x63   : > { %p1280_p1 = scmp.lt.u32.totalorder %s1271_s15, %s1768_s21 }
  0x64   : > { %p1274_p7 = pnand %p1273_p3, %p1272_p13  ;;  %p1279_p0 = por %p1278_p11, %p1277_p5 }
  0x66   : > { %p1275_p9 = pneg %p1274_p7  ;;  %p1281_p2 = por %p1280_p1, %p1279_p0 }
  0x68   : > { %p1282_p10 = pnand %p1281_p2, %p1275_p9 }
  0x6a   : > { %1285 = shalt.err (!%p1282_p10)
}
  0x6b   : > { %s1286_s17 = scalar_lea.vmem %s1778_s7, 128  ;;  %s1521_s9 = smov [#allocation3]  }
  0x6c   : > { %p1287_p13 = scmp.ne.s32.totalorder %s1778_s7, %s1286_s17  ;;  %s1291_s12 = sshll.u32 %s1521_s9, 4  ;;  %s1292_s12 = int_to_ptr.vmem [resolvable:$false] %s1291_s12 }
  0x6d   : > { %s1293_s22 = scalar_lea.vmem %s1292_s12, 256  ;;  %p1294_p4 = scmp.lt.s32.totalorder %s1778_s7, %s1292_s12 }
  0x6e   : > { %p1289_p7 = pnand %p1287_p13, %p1273_p3  ;;  %p1295_p5 = scmp.lt.s32.totalorder %s1293_s22, %s1286_s17 }
  0x70   : > { %p1290_p8 = pneg %p1289_p7  ;;  %p1296_p11 = por %p1295_p5, %p1294_p4 }
  0x72   : > { %p1297_p1 = pnand %p1296_p11, %p1290_p8 }
  0x74   : > { %1300 = shalt.err (!%p1297_p1)
}
  0x75   : > { %1105 = dma.hbm_to_vmem [thread:$0]  (!%p1774_p12), %s1768_s21, 128, %s1778_s7, %s231_s30  }
  0x76   : > { %s2238_s15 = sshll.u32 %s1692_s8, 4  ;;  %s2239_s2 = sld [smem:[#allocation30_spill]] }
  0x77   : > { %s279_s17 = scalar_lea.vmem [#allocation8], %s1061_s29 }
  0x78   : > { %s289_s12 = sshll.u32 %s279_s17, 4  ;;  %s1815_s12 = int_to_ptr.vmem [resolvable:$true] %s289_s12 }
  0x7c   : > { %s1811_s9 = scalar_lea.hbm %s2239_s2, %s2238_s15  ;;  %s1306_s30 = scalar_lea.hbm %s2239_s2, 256 }
  0x7d   : > { %s1301_s26 = scalar_lea.hbm %s1811_s9, 64  ;;  %p1307_p2 = scmp.lt.u32.totalorder %s1811_s9, %s2239_s2 }
  0x7e   : > { %p1302_p4 = scmp.ne.s32.totalorder %s1811_s9, %s1301_s26  ;;  %p1308_p0 = scmp.lt.u32.totalorder %s1306_s30, %s1301_s26 }
  0x7f   : > { %p1310_p3 = scmp.lt.u32.totalorder %s1301_s26, %s1811_s9 }
  0x80   : > { %p1304_p8 = pnand %p1302_p4, %p1664_p6  ;;  %p1309_p12 = por %p1308_p0, %p1307_p2 }
  0x82   : > { %p1305_p10 = pneg %p1304_p8  ;;  %p1311_p9 = por %p1310_p3, %p1309_p12 }
  0x84   : > { %p1312_p13 = pnand %p1311_p9, %p1305_p10 }
  0x86   : > { %1315 = shalt.err (!%p1312_p13)
}
  0x87   : > { %s1316_s25 = scalar_lea.vmem %s1815_s12, 64  ;;  %s1522_s5 = smov [#allocation8]  }
  0x88   : > { %p1317_p7 = scmp.ne.s32.totalorder %s1815_s12, %s1316_s25  ;;  %s1321_s17 = sshll.u32 %s1522_s5, 4  ;;  %s1322_s17 = int_to_ptr.vmem [resolvable:$false] %s1321_s17 }
  0x89   : > { %s1323_s7 = scalar_lea.vmem %s1322_s17, 128  ;;  %p1324_p1 = scmp.lt.s32.totalorder %s1815_s12, %s1322_s17 }
  0x8a   : > { %p1319_p5 = pnand %p1317_p7, %p1664_p6  ;;  %p1325_p4 = scmp.lt.s32.totalorder %s1323_s7, %s1316_s25 }
  0x8c   : > { %p1320_p11 = pneg %p1319_p5  ;;  %p1326_p8 = por %p1325_p4, %p1324_p1 }
  0x8e   : > { %p1327_p2 = pnand %p1326_p8, %p1320_p11 }
  0x90   : > { %1330 = shalt.err (!%p1327_p2)
}
  0x91   : > { %s1523_s26 = smov 64   ;;  %s1524_s21 = smov 32  }
  0x92   : > { %s1525_s30 = smov 2   ;;  %p2240_p10 = scmp.ne.s32.totalorder %s2218_s27, 0 }
  0x93   : > { %s2241_s22 = sshll.u32 %s1692_s8, 4  ;;  %s303_s17 = scalar_lea.vmem [#allocation9], %s1061_s29 }
  0x94   : > { %1111 = dma.hbm_to_vmem [thread:$0]  (!%p2240_p10), %s1811_s9, 64, %s1815_s12, %s1658_s11, %s1523_s26, %s1524_s21, %s1525_s30  }
  0x95   : > { %s1847_s5 = scalar_lea.hbm %s2184_s3, %s2241_s22  ;;  %s313_s7 = sshll.u32 %s303_s17, 4  ;;  %s1851_s7 = int_to_ptr.vmem [resolvable:$true] %s313_s7 }
  0x96   : > { %s300_s0 = scalar_lea.sflag [#allocation10], %s1638_s10  ;;  %s1331_s2 = scalar_lea.hbm %s1847_s5, 64 }
  0x97   : > { %p1332_p0 = scmp.ne.s32.totalorder %s1847_s5, %s1331_s2  ;;  %s1336_s9 = scalar_lea.hbm %s2184_s3, 256 }
  0x98   : > { %p1337_p9 = scmp.lt.u32.totalorder %s1847_s5, %s2184_s3  ;;  %p1338_p13 = scmp.lt.u32.totalorder %s1336_s9, %s1331_s2 }
  0x99   : > { %p1334_p12 = pnand %p1332_p0, %p1664_p6  ;;  %p1340_p5 = scmp.lt.u32.totalorder %s1331_s2, %s1847_s5 }
  0x9a   : > { %p1339_p7 = por %p1338_p13, %p1337_p9 }
  0x9b   : > { %p1335_p3 = pneg %p1334_p12 }
  0x9c   : > { %p1341_p11 = por %p1340_p5, %p1339_p7 }
  0x9e   : > { %p1342_p1 = pnand %p1341_p11, %p1335_p3 }
  0xa0   : > { %1345 = shalt.err (!%p1342_p1)
}
  0xa1   : > { %s1346_s29 = scalar_lea.vmem %s1851_s7, 64  ;;  %s1526_s15 = smov [#allocation9]  }
  0xa2   : > { %p1347_p4 = scmp.ne.s32.totalorder %s1851_s7, %s1346_s29  ;;  %s1351_s25 = sshll.u32 %s1526_s15, 4  ;;  %s1352_s25 = int_to_ptr.vmem [resolvable:$false] %s1351_s25 }
  0xa3   : > { %s1353_s17 = scalar_lea.vmem %s1352_s25, 128  ;;  %p1354_p0 = scmp.lt.s32.totalorder %s1851_s7, %s1352_s25 }
  0xa4   : > { %p1349_p8 = pnand %p1347_p4, %p1664_p6  ;;  %p1355_p12 = scmp.lt.s32.totalorder %s1353_s17, %s1346_s29 }
  0xa6   : > { %p1350_p2 = pneg %p1349_p8  ;;  %p1356_p9 = por %p1355_p12, %p1354_p0 }
  0xa8   : > { %p1357_p13 = pnand %p1356_p9, %p1350_p2 }
  0xaa   : > { %1360 = shalt.err (!%p1357_p13)
}
  0xab   : > { %1114 = dma.hbm_to_vmem [thread:$0]  (!%p2240_p10), %s1847_s5, 64, %s1851_s7, %s300_s0, %s1523_s26, %s1524_s21, %s1525_s30  }
  0xac   : > { %p2242_p6 = scmp.ne.s32.totalorder %s2221_s1, 0 }
  0xad   : > { %s2243_s2 = sld [smem:[#allocation17_spill]] (!%p2242_p6)  ;;  %s2244_s14 = sld [smem:[#allocation24_spill]] (!%p2242_p6) }
  0xae   : > { %333 = sbr.rel (%p2242_p6) target bundleno = 549 (0x225), region = 40 }
  0xb3   : > { %s335_s11 = sand.u32 (!%p2242_p6), 1, %s2243_s2   ;;  %p2245_p3 = scmp.ne.s32.totalorder (!%p2242_p6), %s2244_s14, 0 }
  0xb4   : > { %s1883_s8 = sshll.u32 (!%p2242_p6), %s335_s11, 3  ;;  %s336_s9 = scalar_lea.sflag (!%p2242_p6), [#allocation4], %s335_s11 }
  0xb5   : > { %s339_s12 = scalar_lea.vmem [#allocation3], %s1883_s8 }
  0xb6   : > { %1446 = dma.done.wait (%p2245_p3), %s336_s9, 128  }
  0xb7   : > { %1448 = vsyncadd (%p2245_p3), %s336_s9, 4294967168  ;;  %s2246_s27 = sld [smem:[#allocation16_spill]]  ;;  %s344_s0 = sand.u32 1, %s1701_s4  }
  0xb8   : > { %s345_s26 = scalar_lea.sflag [#allocation7], %s344_s0  ;;  %p2247_p10 = scmp.ne.s32.totalorder %s2230_s16, 0 }
  0xbd   : > { %s346_s10 = sand.u32 1, %s2246_s27  }
  0xbe   : > { %s1073_s1 = sshll.u32 %s346_s10, 7 }
  0xbf   : > { %s1892_s21 = scalar_lea.vmem [#allocation6], %s1073_s1 }
  0xc0   : > { %1450 = dma.done.wait (%p2247_p10), %s345_s26, 2112  }
  0xc1   : > { %1452 = vsyncadd (%p2247_p10), %s345_s26, 4294965184  ;;  %s1074_s30 = sshll.u32 %s346_s10, 2  ;;  %s363_s7 = scalar_lea.sflag [#allocation10], %s346_s10 }
  0xc2   : > { %s1898_s5 = scalar_lea.vmem [#allocation8], %s1074_s30  ;;  %s1900_s22 = scalar_lea.vmem [#allocation9], %s1074_s30 }
  0xc3   : > { %1454 = dma.done.wait (%p2247_p10), %s363_s7, 64  }
  0xc4   : > { %1456 = vsyncadd (%p2247_p10), %s363_s7, 4294967232  ;;  %s2248_s4 = sld [smem:[#allocation20_spill]]  ;;  %s409_s29 = sand.u32 1, %s1467_s19  }
  0xc5   : > { %s1076_s25 = sshll.u32 %s409_s29, 4  ;;  %s2249_s14 = sld [smem:[#allocation31_spill]] }
  0xc6   : > { %s1913_s9 = scalar_lea.vmem [#allocation11], %s1076_s25  ;;  %s2250_s27 = sld [smem:[#allocation19_spill]] }
  0xca   : > { %s1077_s15 = sshll.u32 %s2248_s4, 1 }
  0xcb   : > { %p420_p7 = scmp.lt.s32.totalorder %s1077_s15, 3 }
  0xcc   : > { %p1078_p5 = scmp.ne.s32.totalorder %s2250_s27, 0 }
  0xcd   : > { %s2282_s15 = smov (!%p420_p7, %s1077_s15), 3  ;;  %v431_v0 = vlaneseq (!%p1078_p5) }
  0xce   : > { %s422_s11 = scalar_lea.vmem %s2249_s14, %s2282_s15  ;;  %428 = sbr.rel (%p1078_p5) target bundleno = 214 (0xd6), region = 60 }
  0xcf   : > { %v432_v1 = vshrl.u32 (!%p1078_p5), %v431_v0, 7  ;;  %v429_v2 = vld [vmem:[%s422_s11] sm:$0x3] (!%p1078_p5) }
  0xd1   : > { %v433_v3 = vsub.s32 (!%p1078_p5), 0, %v432_v1  ;;  %v437_v4 = vsub.s32 (!%p1078_p5), 1, %v432_v1 }
  0xd3   : > { %v434_v5 = vrot.slane (!%p1078_p5), %v429_v2, %v433_v3  ;;  %v438_v6 = vrot.slane (!%p1078_p5), %v429_v2, %v437_v4 }
  0xd5   : > { %441 = vst [vmem:[#allocation2] sm:$0xff] %v434_v5  ;;  %442 = vst [vmem:[#allocation2 + $0x8] sm:$0xff] %v438_v6 }
  0xd6 PF: > { %v444_v7 = vld [vmem:[%s1892_s21 + $0x8] sm:$0xff]  ;;  %v591_v8 = vlaneseq  ;;  %v443_v11 = vld [vmem:[%s1892_s21] sm:$0xff]  ;;  %v446_v18 = vld [vmem:[%s1892_s21 + $0x18] sm:$0xff]  ;;  %s2251_s16 = sld [smem:[#allocation19_spill]] }
  0xd7   : > { %v460_v9 = vunpack.c.0.s8 %v444_v7  ;;  %v462_v10 = vunpack.c.1.s8 %v444_v7  ;;  %v464_v12 = vunpack.c.2.s8 %v444_v7  ;;  %v466_v13 = vunpack.c.3.s8 %v444_v7  ;;  %v587_v21 = vld [vmem:[%s1900_s22] sm:$0x3]  ;;  %v675_v22 = vld [vmem:[%s1898_s5] sm:$0x3]  ;;  %v445_v29 = vld [vmem:[%s1892_s21 + $0x10] sm:$0xff] }
  0xd8   : > { %v592_v14 = vshrl.u32 %v591_v8, 7  ;;  %v459_v15 = vunpack.c.0.s8 %v443_v11  ;;  %v461_v16 = vunpack.c.1.s8 %v443_v11  ;;  %v463_v17 = vunpack.c.2.s8 %v443_v11  ;;  %v448_v2 = vld [vmem:[%s1892_s21 + $0x28] sm:$0xff] }
  0xd9   : > { %v524_v19 = vcvt.s32.f32 %v460_v9  ;;  %v526_v20 = vcvt.s32.f32 %v462_v10  ;;  %v528_v23 = vcvt.s32.f32 %v464_v12  ;;  %v530_v24 = vcvt.s32.f32 %v466_v13 }
  0xda   : > { %v1921_v25 = vsub.s32 1, %v592_v14  ;;  %v523_v26 = vcvt.s32.f32 %v459_v15  ;;  %v525_v27 = vcvt.s32.f32 %v461_v16  ;;  %v1923_v28 = vsub.s32 0, %v592_v14  ;;  %v447_v15 = vld [vmem:[%s1892_s21 + $0x20] sm:$0xff] }
  0xdb   : > { %v465_v30 = vunpack.c.3.s8 %v443_v11  ;;  %v527_v31 = vcvt.s32.f32 %v463_v17  ;;  %v468_v32 = vunpack.c.0.s8 %v446_v18  ;;  %v470_v33 = vunpack.c.1.s8 %v446_v18 }
  0xdc   : > { %v1927_v34 = vrot.slane %v587_v21, %v1921_v25  ;;  %v1930_v35 = vrot.slane %v675_v22, %v1921_v25  ;;  %v1933_v36 = vrot.slane %v587_v21, %v1923_v28  ;;  %v1936_v37 = vrot.slane %v675_v22, %v1923_v28  ;;  %p1081_p11 = scmp.ne.s32.totalorder %s2251_s16, 1 }
  0xdd   : > { %v529_v38 = vcvt.s32.f32 %v465_v30  ;;  %v532_v39 = vcvt.s32.f32 %v468_v32  ;;  %v534_v40 = vcvt.s32.f32 %v470_v33  ;;  %v467_v41 = vunpack.c.0.s8 %v445_v29 }
  0xde   : > { %v612_v42 = vsub.f32 %v524_v19, %v1927_v34  ;;  %v614_v43 = vsub.f32 %v526_v20, %v1927_v34  ;;  %v611_v44 = vsub.f32 %v523_v26, %v1933_v36  ;;  %v613_v45 = vsub.f32 %v525_v27, %v1933_v36 }
  0xdf   : > { %v616_v46 = vsub.f32 %v528_v23, %v1927_v34  ;;  %v618_v47 = vsub.f32 %v530_v24, %v1927_v34  ;;  %v615_v48 = vsub.f32 %v527_v31, %v1933_v36  ;;  %v617_v49 = vsub.f32 %v529_v38, %v1933_v36 }
  0xe0   : > { %v700_v50 = vmul.f32 %v1930_v35, %v612_v42  ;;  %v702_v51 = vmul.f32 %v1930_v35, %v614_v43  ;;  %v699_v52 = vmul.f32 %v1936_v37, %v611_v44  ;;  %v701_v53 = vmul.f32 %v1936_v37, %v613_v45 }
  0xe1   : > { %v704_v54 = vmul.f32 %v1930_v35, %v616_v46  ;;  %v706_v55 = vmul.f32 %v1930_v35, %v618_v47  ;;  %v703_v56 = vmul.f32 %v1936_v37, %v615_v48  ;;  %v705_v57 = vmul.f32 %v1936_v37, %v617_v49  ;;  %v450_v46 = vld [vmem:[%s1892_s21 + $0x38] sm:$0xff] }
  0xe2   : > { %v764_v58 = vpack.c.bf16 %v702_v51, %v700_v50  ;;  %v763_v59 = vpack.c.bf16 %v701_v53, %v699_v52  ;;  %v620_v60 = vsub.f32 %v532_v39, %v1927_v34  ;;  %v622_v61 = vsub.f32 %v534_v40, %v1927_v34 }
  0xe3   : > { %v766_v62 = vpack.c.bf16 %v706_v55, %v704_v54  ;;  %v765_v63 = vpack.c.bf16 %v705_v57, %v703_v56  ;;  %v469_v0 = vunpack.c.1.s8 %v445_v29  ;;  %v531_v1 = vcvt.s32.f32 %v467_v41 }
  0xe4   : > { %805 = vmatprep.subr.bf16.mxu0 %v764_v58  ;;  %v708_v3 = vmul.f32 %v1930_v35, %v620_v60  ;;  %v710_v4 = vmul.f32 %v1930_v35, %v622_v61  ;;  %v472_v5 = vunpack.c.2.s8 %v446_v18  ;;  %v474_v6 = vunpack.c.3.s8 %v446_v18 }
  0xe5   : > { %806 = vmatpush1.bf16.msra.mxu0 %v763_v59  ;;  %v533_v7 = vcvt.s32.f32 %v469_v0  ;;  %v619_v8 = vsub.f32 %v531_v1, %v1933_v36  ;;  %v471_v9 = vunpack.c.2.s8 %v445_v29  ;;  %v473_v10 = vunpack.c.3.s8 %v445_v29  ;;  %v449_v59 = vld [vmem:[%s1892_s21 + $0x30] sm:$0xff] }
  0xe6   : > { %807 = vmatprep.subr.bf16.mxu0 %v766_v62  ;;  %v768_v11 = vpack.c.bf16 %v710_v4, %v708_v3  ;;  %v536_v12 = vcvt.s32.f32 %v472_v5  ;;  %v538_v13 = vcvt.s32.f32 %v474_v6  ;;  %v476_v14 = vunpack.c.0.s8 %v448_v2 }
  0xe7   : > { %v621_v16 = vsub.f32 %v533_v7, %v1933_v36  ;;  %v707_v17 = vmul.f32 %v1936_v37, %v619_v8  ;;  %v535_v19 = vcvt.s32.f32 %v471_v9  ;;  %v537_v20 = vcvt.s32.f32 %v473_v10 }
  0xe8   : > { %v624_v18 = vsub.f32 %v536_v12, %v1927_v34  ;;  %v626_v21 = vsub.f32 %v538_v13, %v1927_v34  ;;  %v478_v22 = vunpack.c.1.s8 %v448_v2  ;;  %v540_v23 = vcvt.s32.f32 %v476_v14 }
  0xe9   : > { %808 = vmatpush1.bf16.msra.mxu0 %v765_v63  ;;  %v709_v24 = vmul.f32 %v1936_v37, %v621_v16  ;;  %v623_v26 = vsub.f32 %v535_v19, %v1933_v36  ;;  %v625_v27 = vsub.f32 %v537_v20, %v1933_v36  ;;  %v475_v29 = vunpack.c.0.s8 %v447_v15 }
  0xea   : > { %809 = vmatprep.subr.bf16.mxu0 %v768_v11  ;;  %v712_v30 = vmul.f32 %v1930_v35, %v624_v18  ;;  %v714_v31 = vmul.f32 %v1930_v35, %v626_v21  ;;  %v542_v32 = vcvt.s32.f32 %v478_v22  ;;  %v628_v33 = vsub.f32 %v540_v23, %v1927_v34  ;;  %v1993_v18 = vld [vmem:[%s1892_s21 + $0x48] sm:$0xff] }
  0xeb   : > { %v767_v38 = vpack.c.bf16 %v709_v24, %v707_v17  ;;  %v711_v39 = vmul.f32 %v1936_v37, %v623_v26  ;;  %v713_v40 = vmul.f32 %v1936_v37, %v625_v27  ;;  %v477_v41 = vunpack.c.1.s8 %v447_v15 }
  0xec   : > { %v770_v42 = vpack.c.bf16 %v714_v31, %v712_v30  ;;  %v630_v43 = vsub.f32 %v542_v32, %v1927_v34  ;;  %v716_v44 = vmul.f32 %v1930_v35, %v628_v33  ;;  %v539_v45 = vcvt.s32.f32 %v475_v29 }
  0xed   : > { %810 = vmatpush1.bf16.msra.mxu0 %v767_v38  ;;  %v769_v47 = vpack.c.bf16 %v713_v40, %v711_v39  ;;  %v541_v48 = vcvt.s32.f32 %v477_v41  ;;  %v480_v49 = vunpack.c.2.s8 %v448_v2  ;;  %v482_v50 = vunpack.c.3.s8 %v448_v2  ;;  %v588_v39 = vld [vmem:[%s1900_s22 + $0x2] sm:$0x3] }
  0xee   : > { %811 = vmatprep.subr.bf16.mxu0 %v770_v42  ;;  %v718_v51 = vmul.f32 %v1930_v35, %v630_v43  ;;  %v627_v52 = vsub.f32 %v539_v45, %v1933_v36  ;;  %v479_v53 = vunpack.c.2.s8 %v447_v15  ;;  %v481_v54 = vunpack.c.3.s8 %v447_v15 }
  0xef   : > { %v629_v55 = vsub.f32 %v541_v48, %v1933_v36  ;;  %v544_v56 = vcvt.s32.f32 %v480_v49  ;;  %v546_v57 = vcvt.s32.f32 %v482_v50  ;;  %v484_v58 = vunpack.c.0.s8 %v450_v46  ;;  %v676_v48 = vld [vmem:[%s1898_s5 + $0x2] sm:$0x3] }
  0xf0   : > { %v772_v60 = vpack.c.bf16 %v718_v51, %v716_v44  ;;  %v715_v61 = vmul.f32 %v1936_v37, %v627_v52  ;;  %v543_v62 = vcvt.s32.f32 %v479_v53  ;;  %v545_v63 = vcvt.s32.f32 %v481_v54  ;;  %v451_v49 = vld [vmem:[%s1892_s21 + $0x40] sm:$0xff] }
  0xf1   : > { %812 = vmatpush1.bf16.msra.mxu0 %v769_v47  ;;  %v717_v0 = vmul.f32 %v1936_v37, %v629_v55  ;;  %v632_v1 = vsub.f32 %v544_v56, %v1927_v34  ;;  %v634_v2 = vsub.f32 %v546_v57, %v1927_v34  ;;  %v486_v3 = vunpack.c.1.s8 %v450_v46 }
  0xf2   : > { %813 = vmatprep.subr.bf16.mxu0 %v772_v60  ;;  %v631_v4 = vsub.f32 %v543_v62, %v1933_v36  ;;  %v633_v5 = vsub.f32 %v545_v63, %v1933_v36  ;;  %v548_v6 = vcvt.s32.f32 %v484_v58  ;;  %v483_v7 = vunpack.c.0.s8 %v449_v59 }
  0xf3   : > { %v771_v8 = vpack.c.bf16 %v717_v0, %v715_v61  ;;  %v720_v9 = vmul.f32 %v1930_v35, %v632_v1  ;;  %v722_v10 = vmul.f32 %v1930_v35, %v634_v2  ;;  %v550_v11 = vcvt.s32.f32 %v486_v3 }
  0xf4   : > { %v719_v12 = vmul.f32 %v1936_v37, %v631_v4  ;;  %v721_v13 = vmul.f32 %v1936_v37, %v633_v5  ;;  %v636_v14 = vsub.f32 %v548_v6, %v1927_v34  ;;  %v485_v15 = vunpack.c.1.s8 %v449_v59 }
  0xf5   : > { %814 = vmatpush1.bf16.msra.mxu0 %v771_v8  ;;  %v774_v16 = vpack.c.bf16 %v722_v10, %v720_v9  ;;  %v638_v17 = vsub.f32 %v550_v11, %v1927_v34  ;;  %v547_v19 = vcvt.s32.f32 %v483_v7  ;;  %v488_v20 = vunpack.c.2.s8 %v450_v46 }
  0xf6   : > { %v773_v21 = vpack.c.bf16 %v721_v13, %v719_v12  ;;  %v724_v22 = vmul.f32 %v1930_v35, %v636_v14  ;;  %v549_v23 = vcvt.s32.f32 %v485_v15  ;;  %v490_v24 = vunpack.c.3.s8 %v450_v46  ;;  %v453_v13 = vld [vmem:[%s1892_s21 + $0x50] sm:$0xff] }
  0xf7   : > { %815 = vmatprep.subr.bf16.mxu0 %v774_v16  ;;  %v726_v26 = vmul.f32 %v1930_v35, %v638_v17  ;;  %v635_v27 = vsub.f32 %v547_v19, %v1933_v36  ;;  %v552_v29 = vcvt.s32.f32 %v488_v20  ;;  %v487_v30 = vunpack.c.2.s8 %v449_v59 }
  0xf8   : > { %v637_v31 = vsub.f32 %v549_v23, %v1933_v36  ;;  %v554_v32 = vcvt.s32.f32 %v490_v24  ;;  %v489_v33 = vunpack.c.3.s8 %v449_v59  ;;  %v492_v38 = vunpack.c.0.s8 %v1993_v18 }
  0xf9   : > { %816 = vmatpush1.bf16.msra.mxu0 %v773_v21  ;;  %v776_v40 = vpack.c.bf16 %v726_v26, %v724_v22  ;;  %v723_v41 = vmul.f32 %v1936_v37, %v635_v27  ;;  %v640_v42 = vsub.f32 %v552_v29, %v1927_v34  ;;  %v551_v43 = vcvt.s32.f32 %v487_v30 }
  0xfa   : > { %v725_v44 = vmul.f32 %v1936_v37, %v637_v31  ;;  %v642_v45 = vsub.f32 %v554_v32, %v1927_v34  ;;  %v553_v46 = vcvt.s32.f32 %v489_v33  ;;  %v494_v47 = vunpack.c.1.s8 %v1993_v18 }
  0xfb   : > { %817 = vmatprep.subr.bf16.mxu0 %v776_v40  ;;  %v728_v50 = vmul.f32 %v1930_v35, %v640_v42  ;;  %v639_v51 = vsub.f32 %v551_v43, %v1933_v36  ;;  %v556_v52 = vcvt.s32.f32 %v492_v38  ;;  %v2011_v53 = vrot.slane %v588_v39, %v1921_v25 }
  0xfc   : > { %v775_v54 = vpack.c.bf16 %v725_v44, %v723_v41  ;;  %v730_v55 = vmul.f32 %v1930_v35, %v642_v45  ;;  %v641_v34 = vsub.f32 %v553_v46, %v1933_v36  ;;  %v558_v56 = vcvt.s32.f32 %v494_v47  ;;  %v456_v44 = vld [vmem:[%s1892_s21 + $0x68] sm:$0xff] }
  0xfd   : > { %v727_v57 = vmul.f32 %v1936_v37, %v639_v51  ;;  %v644_v58 = vsub.f32 %v556_v52, %v2011_v53  ;;  %v2018_v59 = vrot.slane %v676_v48, %v1921_v25  ;;  %v491_v60 = vunpack.c.0.s8 %v451_v49  ;;  %v454_v25 = vld [vmem:[%s1892_s21 + $0x58] sm:$0xff] }
  0xfe   : > { %818 = vmatpush1.bf16.msra.mxu0 %v775_v54  ;;  %v778_v61 = vpack.c.bf16 %v730_v55, %v728_v50  ;;  %v729_v62 = vmul.f32 %v1936_v37, %v641_v34  ;;  %v646_v63 = vsub.f32 %v558_v56, %v2011_v53  ;;  %v493_v0 = vunpack.c.1.s8 %v451_v49 }
  0xff   : > { %v732_v35 = vmul.f32 %v2018_v59, %v644_v58  ;;  %v555_v1 = vcvt.s32.f32 %v491_v60  ;;  %v2024_v36 = vrot.slane %v588_v39, %v1923_v28  ;;  %v2027_v2 = vrot.slane %v676_v48, %v1923_v28 }
 0x100   : > { %819 = vmatprep.subr.bf16.mxu0 %v778_v61  ;;  %v777_v3 = vpack.c.bf16 %v729_v62, %v727_v57  ;;  %v734_v4 = vmul.f32 %v2018_v59, %v646_v63  ;;  %v557_v5 = vcvt.s32.f32 %v493_v0  ;;  %v496_v37 = vunpack.c.2.s8 %v1993_v18  ;;  %v455_v57 = vld [vmem:[%s1892_s21 + $0x60] sm:$0xff] }
 0x101   : > { %v643_v6 = vsub.f32 %v555_v1, %v2024_v36  ;;  %v498_v7 = vunpack.c.3.s8 %v1993_v18  ;;  %v495_v8 = vunpack.c.2.s8 %v451_v49  ;;  %v497_v9 = vunpack.c.3.s8 %v451_v49 }
 0x102   : > { %820 = vmatpush1.bf16.msra.mxu0 %v777_v3  ;;  %v780_v10 = vpack.c.bf16 %v734_v4, %v732_v35  ;;  %v645_v28 = vsub.f32 %v557_v5, %v2024_v36  ;;  %v560_v11 = vcvt.s32.f32 %v496_v37  ;;  %v500_v12 = vunpack.c.0.s8 %v454_v25 }
 0x103   : > { %v731_v14 = vmul.f32 %v2027_v2, %v643_v6  ;;  %v562_v15 = vcvt.s32.f32 %v498_v7  ;;  %v559_v16 = vcvt.s32.f32 %v495_v8  ;;  %v561_v17 = vcvt.s32.f32 %v497_v9 }
 0x104   : > { %821 = vmatprep.subr.bf16.mxu0 %v780_v10  ;;  %v733_v19 = vmul.f32 %v2027_v2, %v645_v28  ;;  %v648_v20 = vsub.f32 %v560_v11, %v2011_v53  ;;  %v502_v18 = vunpack.c.1.s8 %v454_v25  ;;  %v564_v21 = vcvt.s32.f32 %v500_v12 }
 0x105   : > { %v650_v22 = vsub.f32 %v562_v15, %v2011_v53  ;;  %v647_v23 = vsub.f32 %v559_v16, %v2024_v36  ;;  %v649_v24 = vsub.f32 %v561_v17, %v2024_v36  ;;  %v499_v26 = vunpack.c.0.s8 %v453_v13 }
 0x106   : > { %v779_v27 = vpack.c.bf16 %v733_v19, %v731_v14  ;;  %v736_v29 = vmul.f32 %v2018_v59, %v648_v20  ;;  %v566_v30 = vcvt.s32.f32 %v502_v18  ;;  %v652_v31 = vsub.f32 %v564_v21, %v2011_v53  ;;  %v458_v18 = vld [vmem:[%s1892_s21 + $0x78] sm:$0xff] }
 0x107   : > { %v738_v32 = vmul.f32 %v2018_v59, %v650_v22  ;;  %v735_v33 = vmul.f32 %v2027_v2, %v647_v23  ;;  %v737_v38 = vmul.f32 %v2027_v2, %v649_v24  ;;  %v501_v39 = vunpack.c.1.s8 %v453_v13 }
 0x108   : > { %822 = vmatpush1.bf16.msra.mxu0 %v779_v27  ;;  %v654_v40 = vsub.f32 %v566_v30, %v2011_v53  ;;  %v740_v41 = vmul.f32 %v2018_v59, %v652_v31  ;;  %v563_v42 = vcvt.s32.f32 %v499_v26  ;;  %v504_v43 = vunpack.c.2.s8 %v454_v25  ;;  %v457_v31 = vld [vmem:[%s1892_s21 + $0x70] sm:$0xff] }
 0x109   : > { %v782_v45 = vpack.c.bf16 %v738_v32, %v736_v29  ;;  %v781_v46 = vpack.c.bf16 %v737_v38, %v735_v33  ;;  %v565_v47 = vcvt.s32.f32 %v501_v39  ;;  %v506_v48 = vunpack.c.3.s8 %v454_v25 }
 0x10a   : > { %v742_v49 = vmul.f32 %v2018_v59, %v654_v40  ;;  %v651_v50 = vsub.f32 %v563_v42, %v2024_v36  ;;  %v568_v51 = vcvt.s32.f32 %v504_v43  ;;  %v503_v52 = vunpack.c.2.s8 %v453_v13 }
 0x10b   : > { %823 = vmatprep.subr.bf16.mxu0 %v782_v45  ;;  %v653_v54 = vsub.f32 %v565_v47, %v2024_v36  ;;  %v570_v55 = vcvt.s32.f32 %v506_v48  ;;  %v505_v34 = vunpack.c.3.s8 %v453_v13  ;;  %v508_v56 = vunpack.c.0.s8 %v456_v44 }
 0x10c   : > { %824 = vmatpush1.bf16.msra.mxu0 %v781_v46  ;;  %v784_v58 = vpack.c.bf16 %v742_v49, %v740_v41  ;;  %v739_v60 = vmul.f32 %v2027_v2, %v651_v50  ;;  %v656_v61 = vsub.f32 %v568_v51, %v2011_v53  ;;  %v567_v62 = vcvt.s32.f32 %v503_v52 }
 0x10d   : > { %v741_v63 = vmul.f32 %v2027_v2, %v653_v54  ;;  %v658_v0 = vsub.f32 %v570_v55, %v2011_v53  ;;  %v569_v35 = vcvt.s32.f32 %v505_v34  ;;  %v510_v1 = vunpack.c.1.s8 %v456_v44 }
 0x10e   : > { %825 = vmatprep.subr.bf16.mxu0 %v784_v58  ;;  %v744_v25 = vmul.f32 %v2018_v59, %v656_v61  ;;  %v655_v3 = vsub.f32 %v567_v62, %v2024_v36  ;;  %v572_v4 = vcvt.s32.f32 %v508_v56  ;;  %v507_v5 = vunpack.c.0.s8 %v455_v57 }
 0x10f   : > { %v783_v37 = vpack.c.bf16 %v741_v63, %v739_v60  ;;  %v746_v6 = vmul.f32 %v2018_v59, %v658_v0  ;;  %v657_v7 = vsub.f32 %v569_v35, %v2024_v36  ;;  %v574_v8 = vcvt.s32.f32 %v510_v1 }
 0x110   : > { %v743_v9 = vmul.f32 %v2027_v2, %v655_v3  ;;  %v660_v10 = vsub.f32 %v572_v4, %v2011_v53  ;;  %v509_v28 = vunpack.c.1.s8 %v455_v57  ;;  %v571_v11 = vcvt.s32.f32 %v507_v5  ;;  %v797_v4 = vld [vmem:[%s339_s12] sm:$0xff] }
 0x111   : > { %826 = vmatpush1.bf16.msra.mxu0 %v783_v37  ;;  %v786_v12 = vpack.c.bf16 %v746_v6, %v744_v25  ;;  %v745_v13 = vmul.f32 %v2027_v2, %v657_v7  ;;  %v662_v14 = vsub.f32 %v574_v8, %v2011_v53  ;;  %v512_v15 = vunpack.c.2.s8 %v456_v44 }
 0x112   : > { %v748_v16 = vmul.f32 %v2018_v59, %v660_v10  ;;  %v573_v17 = vcvt.s32.f32 %v509_v28  ;;  %v659_v19 = vsub.f32 %v571_v11, %v2024_v36  ;;  %v514_v20 = vunpack.c.3.s8 %v456_v44 }
 0x113   : > { %827 = vmatprep.subr.bf16.mxu0 %v786_v12  ;;  %v785_v21 = vpack.c.bf16 %v745_v13, %v743_v9  ;;  %v750_v22 = vmul.f32 %v2018_v59, %v662_v14  ;;  %v576_v23 = vcvt.s32.f32 %v512_v15  ;;  %v511_v24 = vunpack.c.2.s8 %v455_v57 }
 0x114   : > { %v661_v26 = vsub.f32 %v573_v17, %v2024_v36  ;;  %v747_v27 = vmul.f32 %v2027_v2, %v659_v19  ;;  %v578_v29 = vcvt.s32.f32 %v514_v20  ;;  %v513_v30 = vunpack.c.3.s8 %v455_v57 }
 0x115   : > { %828 = vmatpush1.bf16.msra.mxu0 %v785_v21  ;;  %v788_v32 = vpack.c.bf16 %v750_v22, %v748_v16  ;;  %v664_v33 = vsub.f32 %v576_v23, %v2011_v53  ;;  %v575_v38 = vcvt.s32.f32 %v511_v24  ;;  %v516_v39 = vunpack.c.0.s8 %v458_v18  ;;  %v795_v23 = vld [vmem:[#allocation2] sm:$0xff]  ;;  %v796_v24 = vld [vmem:[#allocation2 + $0x8] sm:$0xff] }
 0x116   : > { %v749_v40 = vmul.f32 %v2027_v2, %v661_v26  ;;  %v666_v41 = vsub.f32 %v578_v29, %v2011_v53  ;;  %v577_v42 = vcvt.s32.f32 %v513_v30  ;;  %v518_v43 = vunpack.c.1.s8 %v458_v18 }
 0x117   : > { %829 = vmatprep.subr.bf16.mxu0 %v788_v32  ;;  %v752_v44 = vmul.f32 %v2018_v59, %v664_v33  ;;  %v663_v45 = vsub.f32 %v575_v38, %v2024_v36  ;;  %v580_v46 = vcvt.s32.f32 %v516_v39  ;;  %v515_v47 = vunpack.c.0.s8 %v457_v31 }
 0x118   : > { %v787_v48 = vpack.c.bf16 %v749_v40, %v747_v27  ;;  %v754_v49 = vmul.f32 %v2018_v59, %v666_v41  ;;  %v665_v50 = vsub.f32 %v577_v42, %v2024_v36  ;;  %v582_v51 = vcvt.s32.f32 %v518_v43 }
 0x119   : > { %v751_v52 = vmul.f32 %v2027_v2, %v663_v45  ;;  %v668_v54 = vsub.f32 %v580_v46, %v2011_v53  ;;  %v517_v55 = vunpack.c.1.s8 %v457_v31  ;;  %v579_v34 = vcvt.s32.f32 %v515_v47 }
 0x11a   : > { %830 = vmatpush1.bf16.msra.mxu0 %v787_v48  ;;  %v790_v56 = vpack.c.bf16 %v754_v49, %v752_v44  ;;  %v753_v57 = vmul.f32 %v2027_v2, %v665_v50  ;;  %v670_v58 = vsub.f32 %v582_v51, %v2011_v53  ;;  %v520_v60 = vunpack.c.2.s8 %v458_v18 }
 0x11b   : > { %v756_v61 = vmul.f32 %v2018_v59, %v668_v54  ;;  %v581_v62 = vcvt.s32.f32 %v517_v55  ;;  %v667_v63 = vsub.f32 %v579_v34, %v2024_v36  ;;  %v522_v0 = vunpack.c.3.s8 %v458_v18 }
 0x11c   : > { %831 = vmatprep.subr.bf16.mxu0 %v790_v56  ;;  %v789_v35 = vpack.c.bf16 %v753_v57, %v751_v52  ;;  %v758_v1 = vmul.f32 %v2018_v59, %v670_v58  ;;  %v584_v25 = vcvt.s32.f32 %v520_v60  ;;  %v519_v3 = vunpack.c.2.s8 %v457_v31 }
 0x11d   : > { %v669_v5 = vsub.f32 %v581_v62, %v2024_v36  ;;  %v755_v37 = vmul.f32 %v2027_v2, %v667_v63  ;;  %v586_v6 = vcvt.s32.f32 %v522_v0  ;;  %v521_v7 = vunpack.c.3.s8 %v457_v31 }
 0x11e   : > { %832 = vmatpush1.bf16.msra.mxu0 %v789_v35  ;;  %v792_v8 = vpack.c.bf16 %v758_v1, %v756_v61  ;;  %v672_v9 = vsub.f32 %v584_v25, %v2011_v53  ;;  %v583_v10 = vcvt.s32.f32 %v519_v3  ;;  %v1080_v13 = vcombine.high %v797_v4, %v797_v4 }
 0x11f   : > { %v757_v28 = vmul.f32 %v2027_v2, %v669_v5  ;;  %v674_v11 = vsub.f32 %v586_v6, %v2011_v53  ;;  %v585_v12 = vcvt.s32.f32 %v521_v7  ;;  %v1079_v22 = vcombine.low %v797_v4, %v797_v4 }
 0x120   : > { %833 = vmatprep.subr.bf16.mxu0 %v792_v8  ;;  %v760_v14 = vmul.f32 %v2018_v59, %v672_v9  ;;  %v671_v15 = vsub.f32 %v583_v10, %v2024_v36  ;;  %837 = vmatprep.mubr.bf16.mxu0 %v1080_v13 }
 0x121   : > { %v791_v16 = vpack.c.bf16 %v757_v28, %v755_v37  ;;  %v762_v17 = vmul.f32 %v2018_v59, %v674_v11  ;;  %v673_v19 = vsub.f32 %v585_v12, %v2024_v36 }
 0x122   : > { %v759_v20 = vmul.f32 %v2027_v2, %v671_v15 }
 0x123   : > { %834 = vmatpush1.bf16.msra.mxu0 %v791_v16  ;;  %v794_v18 = vpack.c.bf16 %v762_v17, %v760_v14  ;;  %v761_v21 = vmul.f32 %v2027_v2, %v673_v19 }
 0x125   : > { %835 = vmatprep.subr.bf16.mxu0 %v794_v18  ;;  %v793_v53 = vpack.c.bf16 %v761_v21, %v759_v20 }
 0x127   : > { %836 = vmatpush1.bf16.msra.mxu0 %v793_v53 }
 0x12a   : > { %838 = vmatmul.mubr.bf16.vlgmr.msra.gmra.mrb[0].mxu0 %v1079_v22 }
 0x1fb   : > { %853 = sbr.rel (%p1081_p11) target bundleno = 522 (0x20a), region = 64 }
 0x1fd   : > { %v839_v26 = vpop.f32.mrb[0].mxu0 }
 0x1fe   : > { %v846_v27 = vadd.f32 %v839_v26, %v795_v23  ;;  %v841_v29 = vpop.f32.mrb[1].mxu0 }
 0x1ff   : > { %v847_v59 = vadd.f32 %v841_v29, %v796_v24  ;;  %v843_v30 = vpop.f32.mrb[2].mxu0 }
 0x200   : > { %848 = vst [vmem:[#allocation2] sm:$0xff] %v846_v27  ;;  %v844_v36 = vpop.f32.mrb[3].mxu0 }
 0x201   : > { %849 = vst [vmem:[#allocation2 + $0x8] sm:$0xff] %v847_v59 }
 0x207   : > { %v854_v31 = vld [vmem:[#allocation2] sm:$0xff] }
 0x208   : > { %v855_v2 = vld [vmem:[#allocation2 + $0x8] sm:$0xff]  ;;  %856 = vst [vmem:[%s1913_s9] sm:$0xff] %v854_v31 }
 0x209   : > { %857 = vst [vmem:[%s1913_s9 + $0x8] sm:$0xff] %v855_v2 }
 0x20a PF: > { %s2252_s8 = sld [smem:[#allocation20_spill]]  ;;  %s2253_s1 = sld [smem:[#allocation32_spill]] }
 0x20b   : > { %s875_s21 = sshll.u32 %s1913_s9, 4  ;;  %s859_s30 = scalar_lea.sflag [#allocation5], %s409_s29  ;;  %s876_s21 = int_to_ptr.vmem [resolvable:$true] %s875_s21 }
 0x20c   : > { %s1361_s5 = scalar_lea.vmem %s876_s21, 256  ;;  %p2254_p4 = scmp.ne.s32.totalorder %s2233_s13, 0 }
 0x20d   : > { %p1362_p1 = scmp.ne.s32.totalorder %s876_s21, %s1361_s5  ;;  %s1527_s7 = smov [#allocation11]  }
 0x20e   : > { %s1365_s22 = sshll.u32 %s1527_s7, 4  ;;  %s1366_s22 = int_to_ptr.vmem [resolvable:$false] %s1365_s22 }
 0x20f   : > { %p1363_p8 = pnand %p1362_p1, %p2254_p4  ;;  %s1367_s4 = scalar_lea.vmem %s1366_s22, 512 }
 0x210   : > { %s1091_s12 = sshll.u32 %s2252_s8, 8  ;;  %p1368_p0 = scmp.lt.s32.totalorder %s876_s21, %s1366_s22 }
 0x211   : > { %s2107_s26 = scalar_lea.hbm %s2253_s1, %s1091_s12  ;;  %p1364_p2 = pneg %p1363_p8 }
 0x212   : > { %p1369_p12 = scmp.lt.s32.totalorder %s1367_s4, %s1361_s5 }
 0x214   : > { %p1370_p9 = por %p1369_p12, %p1368_p0 }
 0x216   : > { %p1371_p13 = pnand %p1370_p9, %p1364_p2 }
 0x218   : > { %1374 = shalt.err (!%p1371_p13)
}
 0x219   : > { %s1375_s29 = scalar_lea.hbm %s2107_s26, 256  ;;  %s1379_s17 = scalar_lea.hbm %s2253_s1, 512 }
 0x21a   : > { %p1376_p6 = scmp.ne.s32.totalorder %s2107_s26, %s1375_s29  ;;  %p1380_p7 = scmp.lt.u32.totalorder %s2107_s26, %s2253_s1 }
 0x21b   : > { %p1381_p5 = scmp.lt.u32.totalorder %s1379_s17, %s1375_s29  ;;  %p1383_p1 = scmp.lt.u32.totalorder %s1375_s29, %s2107_s26 }
 0x21c   : > { %p1377_p3 = pnand %p1376_p6, %p2254_p4 }
 0x21d   : > { %p1382_p11 = por %p1381_p5, %p1380_p7 }
 0x21e   : > { %p1378_p10 = pneg %p1377_p3 }
 0x21f   : > { %p1384_p8 = por %p1383_p1, %p1382_p11 }
 0x221   : > { %p1385_p2 = pnand %p1384_p8, %p1378_p10 }
 0x223   : > { %1388 = shalt.err (!%p1385_p2)
}
 0x224   : > { %1100 = dma.vmem_to_hbm [thread:$0]  (%p2254_p4), %s876_s21, 256, %s2107_s26, %s859_s30  }
 0x225 PF: > { %p1120_p0 = scmp.ge.s32.totalorder %s1515_s6, 2  ;;  %s887_s11 = sand.u32 1, %s1463_s18  }
 0x226   : > { %p2255_p12 = scmp.ne.s32.totalorder %s2234_s28, 0  ;;  %s888_s9 = scalar_lea.sflag [#allocation5], %s887_s11 }
 0x228   : > { %p1116_p9 = pnand %p1120_p0, %p2255_p12 }
 0x22a   : > { %1458 = dma.done.wait (!%p1116_p9), %s888_s9, 256  }
 0x22b   : > { %1460 = vsyncadd (!%p1116_p9), %s888_s9, 4294967040  ;;  %s27_s6 = sadd.s32 1, %s1515_s6   ;;  %s2257_s21 = sld [smem:[#allocation16_spill]] }
 0x22c   : > { %p2134_p13 = scmp.ge.s32.totalorder %s27_s6, 6   ;;  %s2258_s13 = sld [smem:[#allocation27_spill]] }
 0x22d   : > { %s2259_s16 = sld [smem:[#allocation17_spill]]  ;;  %s2260_s25 = sld [smem:[#allocation18_spill]] }
 0x22e   : > { %s2261_s26 = sld [smem:[#allocation26_spill]]  ;;  %s2262_s28 = sld [smem:[#allocation21_spill]] }
 0x22f   : > { %s2263_s8 = sld [smem:[#allocation22_spill]]  ;;  %s2264_s29 = sld [smem:[#allocation23_spill]] }
 0x230   : > { %s2265_s30 = sld [smem:[#allocation25_spill]]  ;;  %s2267_s18 = smov %s1467_s19 }
 0x231   : > { %s2268_s19 = smov %s1471_s20  ;;  %s2269_s20 = smov %s1743_s24 }
 0x232   : > { %s2270_s22 = smov %s1483_s23  ;;  %s2271_s23 = smov %s2258_s13 }
 0x233   : > { %s2272_s24 = smov %s2259_s16  ;;  %26 = sbr.rel (!%p2134_p13) target bundleno = 20 (0x14), region = 133 }
 0x234   : > { %s2273_s27 = smov %s2262_s28 }
 0x235   : > { %s2274_s28 = smov %s2263_s8 }
 0x23a   :  { %893 = vsyncpa [#allocation4], 1 }
 0x23b   :  { %895 = vsyncpa [#allocation4 + $0x1], 1 }
 0x23c   :  { %896 = vsyncpa [#allocation7], 1 }
 0x23d   :  { %898 = vsyncpa [#allocation7 + $0x1], 1 }
 0x23e   :  { %899 = vsyncpa [#allocation10], 1 }
 0x23f   :  { %901 = vsyncpa [#allocation10 + $0x1], 1 }
 0x240   :  { %902 = vsyncpa [#allocation5], 1 }
 0x241   :  { %904 = vsyncpa [#allocation5 + $0x1], 1 }

</bundles_post_ra>
